<compile_context>
chip_gen: v7x
topology: tpu7x:2x2x1
jax: 0.10.0
libtpu: 0.0.40
codegen_flags: <defaults>
</compile_context>

<pallas_src>
import functools

import jax
import jax.numpy as jnp
import numpy as np
from jax.experimental import pallas as pl
from jax.experimental.pallas import tpu as pltpu


def _round_up(x, m):
    return ((x + m - 1) // m) * m


def _choose_tiles(n_nodes):
    """(row tile tm, contraction tile tk, padded node count).

    tk (A's lane dim) is kept larger than tm: fewer k grid steps (~0.35us each)
    and fewer full re-reads of the E operand.  Worst-case VMEM (bf16 A, f32 acc)
    at tm=512 / tk=2048 / d_pad=512 is ~14 MiB with double buffering, well under
    the 48 MiB request and v7x's 64 MiB physical VMEM.
    """
    tk = min(2048, _round_up(n_nodes, 128))
    n_pad = _round_up(n_nodes, tk)
    tm = min(512, n_pad)
    # v7x megacore: keep the 'parallel' row-tile count even so both TCs get work.
    if (n_pad // tm) % 2 == 1 and tm % 16 == 0:
        tm //= 2
    return tm, tk, n_pad


def _block_structure(adj_pad, tm, tk):
    """Compacted per-row-tile schedule of nonzero adjacency blocks.

    Returns (idx_flat, cnt, nblk):
      idx_flat : int32[(n_pad//tm) * nblk] -- k-block to visit at grid step (i, k).
                 Padded entries repeat the last valid block, so the BlockSpec
                 pipeline issues NO additional DMA for them (index unchanged).
      cnt      : int32[n_pad//tm]          -- number of valid blocks per row tile.
      nblk     : python int                -- static k-grid extent (max over rows, >=1).
    """
    nr = adj_pad.shape[0] // tm
    nk = adj_pad.shape[1] // tk
    try:
        a = np.asarray(jax.device_get(adj_pad))
    except Exception:
        # TODO(synk): traced adjacency (e.g. under jit) -> dense fallback schedule.
        idx = np.tile(np.arange(nk, dtype=np.int32), (nr, 1))
        cnt = np.full((nr,), nk, dtype=np.int32)
        return jnp.asarray(idx.reshape(-1)), jnp.asarray(cnt), nk

    nz = np.abs(a).reshape(nr, tm, nk, tk).sum(axis=(1, 3)) > 0.0
    cnt = nz.sum(axis=1).astype(np.int32)
    nblk = max(int(cnt.max()), 1)
    idx = np.zeros((nr, nblk), dtype=np.int32)
    for i in range(nr):
        ks = np.nonzero(nz[i])[0].astype(np.int32)
        if ks.size == 0:
            ks = np.zeros((1,), dtype=np.int32)
        idx[i, : ks.size] = ks
        idx[i, ks.size:] = ks[-1]          # repeat last -> pipeline skips the DMA
    return jnp.asarray(idx.reshape(-1)), jnp.asarray(cnt), nblk


# ----------------------- GCN propagation (block-sparse matmul) -----------------

def _gcn_layer_kernel(idx_ref, cnt_ref, a_ref, e_ref, acc_in_ref, *rest,
                      inv_count, normalize, last):
    # grid = (row tile i ["parallel"], scheduled k block ["arbitrary"]).
    # Computes one layer new_E[i] = sum_{k in schedule(i)} A[i,k] @ E[k] and the
    # running sum; on the final layer only the fused mean[+L2-normalize] output
    # is written (dead new_E / acc writebacks dropped).
    if last:
        final_ref, acc_scratch = rest
    else:
        new_e_ref, acc_out_ref, acc_scratch = rest

    i = pl.program_id(0)
    k = pl.program_id(1)

    @pl.when(k == 0)
    def _():
        acc_scratch[...] = jnp.zeros_like(acc_scratch)

    # Skip padded schedule entries (and fully-empty row tiles): no MXU work.
    @pl.when(k < cnt_ref[i])
    def _():
        acc_scratch[...] += jnp.dot(a_ref[...], e_ref[...],
                                    preferred_element_type=jnp.float32)

    @pl.when(k == pl.num_programs(1) - 1)
    def _():
        layer_out = acc_scratch[...]
        running = acc_in_ref[...] + layer_out
        if last:
            mean = running * jnp.float32(inv_count)
            if normalize:
                ssq = jnp.sum(mean * mean, axis=-1, keepdims=True)
                # rsqrt -> EUP slot; multiply instead of a (tm, d_pad) VPU divide.
                mean = mean * jax.lax.rsqrt(jnp.maximum(ssq, jnp.float32(1e-24)))
            final_ref[...] = mean
        else:
            new_e_ref[...] = layer_out.astype(new_e_ref.dtype)   # narrow E stream
            acc_out_ref[...] = running                            # f32 running sum


def _gcn_layer_call(idx, cnt, nblk, adj_c, e, acc, *, tm, tk, last, normalize,
                    inv_count):
    n_pad = adj_c.shape[0]
    d_pad = e.shape[1]
    grid = (n_pad // tm, nblk)

    a_spec = pl.BlockSpec((tm, tk), lambda i, k, idx_r, cnt_r: (i, idx_r[i * nblk + k]))
    e_spec = pl.BlockSpec((tk, d_pad), lambda i, k, idx_r, cnt_r: (idx_r[i * nblk + k], 0))
    row_spec = pl.BlockSpec((tm, d_pad), lambda i, k, idx_r, cnt_r: (i, 0))

    if last:
        # Only `final` is consumed downstream -> drop the dead new_E / acc streams.
        out_shape = jax.ShapeDtypeStruct((n_pad, d_pad), jnp.float32)
        out_specs = row_spec
    else:
        out_shape = (jax.ShapeDtypeStruct((n_pad, d_pad), e.dtype),       # new E
                     jax.ShapeDtypeStruct((n_pad, d_pad), jnp.float32))   # running sum
        out_specs = (row_spec, row_spec)

    kernel = functools.partial(_gcn_layer_kernel, inv_count=inv_count,
                               normalize=normalize, last=last)

    # NOTE: if profiling shows exposed DMA at row-tile boundaries, add
    #       pipeline_mode=pl.Buffered(3) to a_spec only.
    return pl.pallas_call(
        kernel,
        out_shape=out_shape,
        grid_spec=pltpu.PrefetchScalarGridSpec(
            num_scalar_prefetch=2,
            grid=grid,
            in_specs=[a_spec, e_spec, row_spec],
            out_specs=out_specs,
            scratch_shapes=[pltpu.VMEM((tm, d_pad), jnp.float32)]),
        compiler_params=pltpu.CompilerParams(
            dimension_semantics=("parallel", "arbitrary"),
            vmem_limit_bytes=48 * 1024 * 1024),   # v7x-safe; raise toward 96M on v5e/v6e
    )(idx, cnt, adj_c, e, acc)


def gcn_propagate(adj_c, idx, cnt, nblk, ego_pad, n_layers, *, normalize, tm, tk,
                  compute_dtype):
    """mean_{l=0..L} A^l @ E0, optionally row-L2-normalized (fused epilogue)."""
    inv_count = 1.0 / float(n_layers + 1)
    if n_layers == 0:
        out = ego_pad
        if normalize:
            ssq = jnp.sum(out * out, axis=-1, keepdims=True)
            out = out * jax.lax.rsqrt(jnp.maximum(ssq, 1e-24))
        return out
    e = ego_pad.astype(compute_dtype)   # per-layer E operand (narrow dtype)
    acc = ego_pad                       # running sum (f32)
    for layer in range(n_layers):
        last = layer == n_layers - 1
        outs = _gcn_layer_call(idx, cnt, nblk, adj_c, e, acc, tm=tm, tk=tk,
                               last=last, normalize=normalize, inv_count=inv_count)
        if last:
            return outs
        e, acc = outs


# ----------------------------- SSL logits kernel ------------------------------

def _ssl_logits_kernel(x1_ref, pos_ref, all2_ref, o_ref):
    # o[:, tile] = x1 @ all2_tile.T - pos   (pos precomputed once in the wrapper)
    tot = jax.lax.dot_general(
        x1_ref[...], all2_ref[...],
        dimension_numbers=(((1,), (1,)), ((), ())),
        preferred_element_type=jnp.float32)
    o_ref[...] = tot - pos_ref[...]


def ssl_logits(x1, x2, all2):
    b, d = x1.shape                       # d already padded to a multiple of 128
    n2 = all2.shape[0]
    b_pad = _round_up(b, 8)
    tn = min(2048, _round_up(n2, 128))    # lane-dense output tile
    n2_pad = _round_up(n2, tn)

    pos = jnp.sum(x1 * x2, axis=-1, keepdims=True)   # hoisted out of the tile loop
    x1p = jnp.pad(x1, ((0, b_pad - b), (0, 0)))
    posp = jnp.pad(pos, ((0, b_pad - b), (0, 0)))
    a2p = jnp.pad(all2, ((0, n2_pad - n2), (0, 0)))

    out = pl.pallas_call(
        _ssl_logits_kernel,
        out_shape=jax.ShapeDtypeStruct((b_pad, n2_pad), jnp.float32),
        grid=(n2_pad // tn,),
        in_specs=[pl.BlockSpec((b_pad, d), lambda j: (0, 0)),
                  pl.BlockSpec((b_pad, 1), lambda j: (0, 0)),
                  pl.BlockSpec((tn, d), lambda j: (j, 0))],
        out_specs=pl.BlockSpec((b_pad, tn), lambda j: (0, j)),
        compiler_params=pltpu.CompilerParams(
            dimension_semantics=("parallel",),
            vmem_limit_bytes=48 * 1024 * 1024),
    )(x1p, posp, a2p)
    return out[:b, :n2]


# --------------------------------- Model glue ---------------------------------

class LightGCNPallas:
    def __init__(self, num_users, num_items, embed_dim, norm_adj, n_layers, key,
                 compute_dtype=jnp.bfloat16):
        self.num_users = num_users
        self.num_items = num_items
        self.embed_dim = embed_dim
        self.norm_adj = jnp.asarray(norm_adj, jnp.float32)
        self.n_layers = n_layers
        self._compute_dtype = compute_dtype   # narrow A/E stream dtype (f32 acc kept)
        ku, ki = jax.random.split(key)
        # nn.Embedding default init: N(0, 1)
        self.user_embeddings = jax.random.normal(ku, (num_users, embed_dim), jnp.float32)
        self.item_embeddings = jax.random.normal(ki, (num_items, embed_dim), jnp.float32)
        # TODO(synk): nn.Dropout(0.1) is declared by the PyTorch module but never
        # used in forward, so it is intentionally omitted.

        n_nodes = num_users + num_items
        self._d_pad = _round_up(embed_dim, 128)          # lane-dense features
        self._tm, self._tk, self._n_pad = _choose_tiles(n_nodes)

        # Static across forward calls: padded ego embeddings and the padded /
        # block-analyzed / dtype-cast norm_adj (no per-call padding passes).
        ego = jnp.concatenate([self.user_embeddings, self.item_embeddings], axis=0)
        self._ego_pad = jnp.pad(
            ego, ((0, self._n_pad - n_nodes), (0, self._d_pad - embed_dim)))
        self._norm_adj_prep = self._prepare_adj(self.norm_adj)

    def _prepare_adj(self, adj):
        n = self.num_users + self.num_items
        adj = jnp.asarray(adj, jnp.float32)
        adj_pad = jnp.pad(adj, ((0, self._n_pad - n), (0, self._n_pad - n)))
        idx, cnt, nblk = _block_structure(adj_pad, self._tm, self._tk)
        return adj_pad.astype(self._compute_dtype), idx, cnt, nblk

    def _forward_gcn(self, adj_prep, *, normalize=False):
        adj_c, idx, cnt, nblk = adj_prep
        all_pad = gcn_propagate(adj_c, idx, cnt, nblk, self._ego_pad, self.n_layers,
                                normalize=normalize, tm=self._tm, tk=self._tk,
                                compute_dtype=self._compute_dtype)
        n = self.num_users + self.num_items
        # Slice rows to real node counts; keep zero-padded feature columns
        # (lane-dense, exact for all downstream dot products / norms).
        return all_pad[:self.num_users], all_pad[self.num_users:n]

    def forward(self, sub_graph1, sub_graph2, users, items, neg_items):
        ue, ie = self._forward_gcn(self._norm_adj_prep, normalize=False)
        ue1, ie1 = self._forward_gcn(self._prepare_adj(sub_graph1), normalize=True)
        ue2, ie2 = self._forward_gcn(self._prepare_adj(sub_graph2), normalize=True)

        u = jnp.take(ue, users, axis=0)
        i = jnp.take(ie, items, axis=0)
        ng = jnp.take(ie, neg_items, axis=0)
        u1 = jnp.take(ue1, users, axis=0)
        i1 = jnp.take(ie1, items, axis=0)
        u2 = jnp.take(ue2, users, axis=0)
        i2 = jnp.take(ie2, items, axis=0)

        # sup logits: tiny (B,) reduce-and-subtract — plain JAX.
        sup = jnp.sum(u * i, axis=-1) - jnp.sum(u * ng, axis=-1)

        ssl_user = ssl_logits(u1, u2, ue2)
        ssl_item = ssl_logits(i1, i2, ie2)
        return sup, ssl_user, ssl_item


# ------------------------------ Pure-JAX reference ----------------------------

def _ref_forward_gcn(adj, u_emb, i_emb, n_layers, num_users, compute_dtype):
    ego = jnp.concatenate([u_emb, i_emb], axis=0)
    adj_c = adj.astype(compute_dtype)
    embs = [ego]
    e_c = ego.astype(compute_dtype)
    for _ in range(n_layers):
        e = jnp.dot(adj_c, e_c, preferred_element_type=jnp.float32)
        embs.append(e)
        e_c = e.astype(compute_dtype)
    all_emb = jnp.mean(jnp.stack(embs, axis=1), axis=1)
    return all_emb[:num_users], all_emb[num_users:]


def _ref_normalize(x):
    n = jnp.sqrt(jnp.sum(x * x, axis=-1, keepdims=True))
    return x / jnp.maximum(n, 1e-12)


def _ref_forward(model, sub_graph1, sub_graph2, users, items, neg_items,
                 compute_dtype=jnp.float32):
    ue, ie = _ref_forward_gcn(model.norm_adj, model.user_embeddings,
                              model.item_embeddings, model.n_layers,
                              model.num_users, compute_dtype)
    ue1, ie1 = _ref_forward_gcn(sub_graph1, model.user_embeddings,
                                model.item_embeddings, model.n_layers,
                                model.num_users, compute_dtype)
    ue2, ie2 = _ref_forward_gcn(sub_graph2, model.user_embeddings,
                                model.item_embeddings, model.n_layers,
                                model.num_users, compute_dtype)
    ue1, ie1, ue2, ie2 = map(_ref_normalize, (ue1, ie1, ue2, ie2))
    u = ue[users]; i = ie[items]; n = ie[neg_items]
    u1 = ue1[users]; i1 = ie1[items]
    u2 = ue2[users]; i2 = ie2[items]
    sup = jnp.sum(u * i, -1) - jnp.sum(u * n, -1)
    ssl_u = u1 @ ue2.T - jnp.sum(u1 * u2, -1)[:, None]
    ssl_i = i1 @ ie2.T - jnp.sum(i1 * i2, -1)[:, None]
    return sup, ssl_u, ssl_i


# ------------------------------------- main ------------------------------------

if __name__ == "__main__":
    num_users, num_items, embed_dim, n_layers = 24, 40, 32, 2
    N = num_users + num_items
    B = 16

    key = jax.random.PRNGKey(0)
    k_emb, k_a0, k_a1, k_a2, k_u, k_i, k_n = jax.random.split(key, 7)

    def make_adj(k):
        dense = jax.random.uniform(k, (N, N), jnp.float32)
        mask = (dense > 0.8).astype(jnp.float32)          # sparse-ish pattern
        adj = mask * dense
        deg = jnp.maximum(jnp.sum(adj, axis=1, keepdims=True), 1.0)
        return adj / deg                                  # row-normalized graph

    norm_adj = make_adj(k_a0)
    sub_graph1 = make_adj(k_a1)
    sub_graph2 = make_adj(k_a2)

    users = jax.random.randint(k_u, (B,), 0, num_users, dtype=jnp.int32)
    items = jax.random.randint(k_i, (B,), 0, num_items, dtype=jnp.int32)
    neg_items = jax.random.randint(k_n, (B,), 0, num_items, dtype=jnp.int32)

    # --- Exact-semantics path (f32 adjacency / E stream, matches the PyTorch module) ---
    model_f32 = LightGCNPallas(num_users, num_items, embed_dim, norm_adj, n_layers,
                               k_emb, compute_dtype=jnp.float32)
    out_f32 = model_f32.forward(sub_graph1, sub_graph2, users, items, neg_items)
    jax.block_until_ready(out_f32)
    ref_f32 = _ref_forward(model_f32, sub_graph1, sub_graph2, users, items, neg_items,
                           compute_dtype=jnp.float32)
    for got, want in zip(out_f32, ref_f32):
        # 2e-3 tolerance covers the fused rsqrt-normalize vs sqrt-div reference.
        np.testing.assert_allclose(np.asarray(got), np.asarray(want),
                                   rtol=2e-3, atol=2e-3)

    # --- Perf path (default): bf16 A/E stream, f32 MXU accumulation ---
    model_bf16 = LightGCNPallas(num_users, num_items, embed_dim, norm_adj, n_layers,
                                k_emb)
    out_bf16 = model_bf16.forward(sub_graph1, sub_graph2, users, items, neg_items)
    jax.block_until_ready(out_bf16)
    ref_bf16 = _ref_forward(model_bf16, sub_graph1, sub_graph2, users, items, neg_items,
                            compute_dtype=jnp.bfloat16)   # matching-precision reference
    for got, want in zip(out_bf16, ref_bf16):
        np.testing.assert_allclose(np.asarray(got), np.asarray(want),
                                   rtol=3e-3, atol=3e-3)

    sup, ssl_u, ssl_i = out_bf16
    assert sup.shape == (B,)
    assert ssl_u.shape == (B, num_users)
    assert ssl_i.shape == (B, num_items)

    print("KERNEL_OK")
</pallas_src>

<mosaic_0001>
module attributes {stable_mosaic.version = 11 : i64} {
  func.func @_gcn_layer_kernel(%arg0: i32, %arg1: i32, %arg2: memref<2xi32, #tpu.memory_space<smem>>, %arg3: memref<2xi32, #tpu.memory_space<smem>>, %arg4: memref<64x128xf32, #tpu.memory_space<vmem>>, %arg5: memref<128x128xf32, #tpu.memory_space<vmem>>, %arg6: memref<64x128xf32, #tpu.memory_space<vmem>>, %arg7: memref<64x128xf32, #tpu.memory_space<vmem>>, %arg8: memref<64x128xf32, #tpu.memory_space<vmem>>, %arg9: memref<64x128xf32, #tpu.memory_space<vmem>>) attributes {dimension_semantics = [#tpu.dimension_semantics<parallel>, #tpu.dimension_semantics<arbitrary>], iteration_bounds = array<i64: 2, 1>, scalar_prefetch = 2 : i64, scratch_operands = 1 : i64, tpu.core_type = #tpu.core_type<tc>, window_params = [{transform_indices = @transform_0, window_bounds = array<i64: 64, 128>}, {transform_indices = @transform_1, window_bounds = array<i64: 128, 128>}, {transform_indices = @transform_2, window_bounds = array<i64: 64, 128>}, {transform_indices = @transform_3, window_bounds = array<i64: 64, 128>}, {transform_indices = @transform_4, window_bounds = array<i64: 64, 128>}]} {
    %c0_i32 = arith.constant 0 : i32
    %0 = arith.cmpi eq, %arg1, %c0_i32 : i32
    %1 = arith.extui %0 : i1 to i32
    %c0_i32_0 = arith.constant 0 : i32
    %2 = arith.cmpi ne, %1, %c0_i32_0 : i32
    scf.if %2 {
      %cst = arith.constant 0.000000e+00 : f32
      %11 = vector.broadcast %cst : f32 to vector<64x128xf32>
      %c0 = arith.constant 0 : index
      %c0_4 = arith.constant 0 : index
      %12 = vector.load %arg9[%c0, %c0_4] : memref<64x128xf32, #tpu.memory_space<vmem>>, vector<64x128xf32>
      tpu.vector_store %arg9[%c0, %c0_4], %11 {strides = array<i32>} : memref<64x128xf32, #tpu.memory_space<vmem>>, vector<64x128xf32>,
    } else {
    }
    %3 = arith.index_cast %arg0 : i32 to index
    %4 = memref.load %arg3[%3] : memref<2xi32, #tpu.memory_space<smem>>
    %5 = arith.cmpi slt, %arg1, %4 : i32
    %6 = arith.extui %5 : i1 to i32
    %c0_i32_1 = arith.constant 0 : i32
    %7 = arith.cmpi ne, %6, %c0_i32_1 : i32
    scf.if %7 {
      %c0 = arith.constant 0 : index
      %c0_4 = arith.constant 0 : index
      %11 = vector.load %arg9[%c0, %c0_4] : memref<64x128xf32, #tpu.memory_space<vmem>>, vector<64x128xf32>
      %c0_5 = arith.constant 0 : index
      %c0_6 = arith.constant 0 : index
      %12 = vector.load %arg4[%c0_5, %c0_6] : memref<64x128xf32, #tpu.memory_space<vmem>>, vector<64x128xf32>
      %c0_7 = arith.constant 0 : index
      %c0_8 = arith.constant 0 : index
      %13 = vector.load %arg5[%c0_7, %c0_8] : memref<128x128xf32, #tpu.memory_space<vmem>>, vector<128x128xf32>
      %cst = arith.constant dense<0.000000e+00> : vector<64x128xf32>
      %14 = tpu.matmul %12, %13, %cst {dimension_numbers = #tpu.dot_dimension_numbers<[1], [0], [0], [1], [0, 0, 1, 1], [], []>} : vector<64x128xf32>, vector<128x128xf32>, vector<64x128xf32> -> vector<64x128xf32>
      %15 = arith.addf %11, %14 : vector<64x128xf32>
      %c0_9 = arith.constant 0 : index
      %c0_10 = arith.constant 0 : index
      %16 = vector.load %arg9[%c0_9, %c0_10] : memref<64x128xf32, #tpu.memory_space<vmem>>, vector<64x128xf32>
      tpu.vector_store %arg9[%c0_9, %c0_10], %15 {strides = array<i32>} : memref<64x128xf32, #tpu.memory_space<vmem>>, vector<64x128xf32>,
    } else {
    }
    %c0_i32_2 = arith.constant 0 : i32
    %8 = arith.cmpi eq, %arg1, %c0_i32_2 : i32
    %9 = arith.extui %8 : i1 to i32
    %c0_i32_3 = arith.constant 0 : i32
    %10 = arith.cmpi ne, %9, %c0_i32_3 : i32
    scf.if %10 {
      %c0 = arith.constant 0 : index
      %c0_4 = arith.constant 0 : index
      %11 = vector.load %arg9[%c0, %c0_4] : memref<64x128xf32, #tpu.memory_space<vmem>>, vector<64x128xf32>
      %c0_5 = arith.constant 0 : index
      %c0_6 = arith.constant 0 : index
      %12 = vector.load %arg6[%c0_5, %c0_6] : memref<64x128xf32, #tpu.memory_space<vmem>>, vector<64x128xf32>
      %13 = arith.addf %12, %11 : vector<64x128xf32>
      %c0_7 = arith.constant 0 : index
      %c0_8 = arith.constant 0 : index
      %14 = vector.load %arg7[%c0_7, %c0_8] : memref<64x128xf32, #tpu.memory_space<vmem>>, vector<64x128xf32>
      tpu.vector_store %arg7[%c0_7, %c0_8], %11 {strides = array<i32>} : memref<64x128xf32, #tpu.memory_space<vmem>>, vector<64x128xf32>,
      %c0_9 = arith.constant 0 : index
      %c0_10 = arith.constant 0 : index
      %15 = vector.load %arg8[%c0_9, %c0_10] : memref<64x128xf32, #tpu.memory_space<vmem>>, vector<64x128xf32>
      tpu.vector_store %arg8[%c0_9, %c0_10], %13 {strides = array<i32>} : memref<64x128xf32, #tpu.memory_space<vmem>>, vector<64x128xf32>,
    } else {
    }
    return
  }
  func.func @transform_0(%arg0: i32, %arg1: i32, %arg2: memref<2xi32, #tpu.memory_space<smem>>, %arg3: memref<2xi32, #tpu.memory_space<smem>>) -> (i32, i32) {
    %c1_i32 = arith.constant 1 : i32
    %0 = arith.muli %arg0, %c1_i32 : i32
    %1 = arith.addi %0, %arg1 : i32
    %2 = arith.index_cast %1 : i32 to index
    %3 = memref.load %arg2[%2] : memref<2xi32, #tpu.memory_space<smem>>
    %c0_i32 = arith.constant 0 : i32
    return %arg0, %3 : i32, i32
  }
  func.func @transform_1(%arg0: i32, %arg1: i32, %arg2: memref<2xi32, #tpu.memory_space<smem>>, %arg3: memref<2xi32, #tpu.memory_space<smem>>) -> (i32, i32) {
    %c1_i32 = arith.constant 1 : i32
    %0 = arith.muli %arg0, %c1_i32 : i32
    %1 = arith.addi %0, %arg1 : i32
    %2 = arith.index_cast %1 : i32 to index
    %3 = memref.load %arg2[%2] : memref<2xi32, #tpu.memory_space<smem>>
    %c0_i32 = arith.constant 0 : i32
    %c0_i32_0 = arith.constant 0 : i32
    return %3, %c0_i32 : i32, i32
  }
  func.func @transform_2(%arg0: i32, %arg1: i32, %arg2: memref<2xi32, #tpu.memory_space<smem>>, %arg3: memref<2xi32, #tpu.memory_space<smem>>) -> (i32, i32) {
    %c0_i32 = arith.constant 0 : i32
    %c0_i32_0 = arith.constant 0 : i32
    return %arg0, %c0_i32 : i32, i32
  }
  func.func @transform_3(%arg0: i32, %arg1: i32, %arg2: memref<2xi32, #tpu.memory_space<smem>>, %arg3: memref<2xi32, #tpu.memory_space<smem>>) -> (i32, i32) {
    %c0_i32 = arith.constant 0 : i32
    %c0_i32_0 = arith.constant 0 : i32
    return %arg0, %c0_i32 : i32, i32
  }
  func.func @transform_4(%arg0: i32, %arg1: i32, %arg2: memref<2xi32, #tpu.memory_space<smem>>, %arg3: memref<2xi32, #tpu.memory_space<smem>>) -> (i32, i32) {
    %c0_i32 = arith.constant 0 : i32
    %c0_i32_0 = arith.constant 0 : i32
    return %arg0, %c0_i32 : i32, i32
  }
}

</mosaic_0001>

<bundles_post_ra>
// kernel: tpu_custom_call.1
= control target key start
LH: loop header
LB: loop body
LE: loop exit
PB: predicated region body
PF: predicated region fallthrough
CT: control target
= control target key end

     0   :  { %s1918_s0 = inlined_call_operand.hbm [shape: s32[2], index: 0, kind: input, shape index: {}]   ;;  %s1919_s2 = inlined_call_operand.hbm [shape: f32[128,128], index: 2, kind: input, shape index: {}]   ;;  %s1920_s3 = inlined_call_operand.hbm [shape: f32[128,128], index: 3, kind: input, shape index: {}]   ;;  %s1921_s4 = inlined_call_operand.hbm [shape: f32[128,128], index: 4, kind: input, shape index: {}]   ;;  %s1922_s5 = inlined_call_operand.hbm [shape: f32[128,128], index: 5, kind: output, shape index: {0}]   ;;  %s1923_s6 = inlined_call_operand.hbm [shape: f32[128,128], index: 6, kind: output, shape index: {1}]   ;;  %s1924_s1 = inlined_call_operand.vmem [shape: s32[2], index: 1, kind: input, shape index: {}]  }
   0x1   :  { %1942 = sst [smem:[#allocation31_spill]] %s1920_s3  ;;  %s1045_s23 = scalar_lea.hbm %s1918_s0, 16 }
   0x2   :  { %1943 = sst [smem:[#allocation32_spill]] %s1922_s5  ;;  %p1046_p0 = scmp.ne.s32.totalorder %s1918_s0, %s1045_s23 }
   0x3   :  { %1944 = sst [smem:[#allocation33_spill]] %s1923_s6  ;;  %p1049_p1 = scmp.lt.u32.totalorder %s1045_s23, %s1918_s0 }
   0x5   :  { %p1051_p2 = pnand %p1049_p1, %p1046_p0 }
   0x7   :  { %1054 = shalt.err (!%p1051_p2)  }
   0x8   :  { %s1331_s28 = smov [#allocation4]   ;;  %s14_s9 = sshll.u32 %s1924_s1, 4  ;;  %s15_s9 = int_to_ptr.vmem [resolvable:$true] %s14_s9 }
   0x9   :  { %13 = dma.hbm_to_smem %s1918_s0, 16, %s1331_s28, [#allocation3] }
   0xa   :  { %s1055_s10 = scalar_lea.vmem %s15_s9, 16  ;;  %p1060_p4 = scmp.lt.s32.totalorder %s15_s9, %s15_s9 }
   0xb   :  { %p1056_p3 = scmp.ne.s32.totalorder %s15_s9, %s1055_s10  ;;  %p1061_p5 = scmp.lt.s32.totalorder %s1055_s10, %s1055_s10 }
   0xd   :  { %p1062_p6 = por %p1061_p5, %p1060_p4 }
   0xf   :  { %p1063_p7 = pnand %p1062_p6, %p1056_p3 }
  0x11   :  { %1066 = shalt.err (!%p1063_p7)  }
  0x12   :  { %s1332_s11 = smov [#allocation5]  }
  0x13   :  { %17 = dma.vmem_to_smem %s15_s9, 16, %s1332_s11, [#allocation3] }
  0x14   :  { %1261 = dma.done.wait [#allocation3], 32 }
  0x15   :  { %1262 = vsyncadd [#allocation3], 4294967264 }
  0x16   :  { %19 = sfence }
  0x17   :  { %20 = vsyncpa [#allocation7], 0 }
  0x18   :  { %22 = vsyncpa [#allocation7 + $0x1], 0 }
  0x19   :  { %23 = vsyncpa [#allocation10], 0 }
  0x1a   :  { %25 = vsyncpa [#allocation10 + $0x1], 0 }
  0x1b   :  { %26 = vsyncpa [#allocation8], 0 }
  0x1c   :  { %28 = vsyncpa [#allocation8 + $0x1], 0 }
  0x1d   :  { %29 = vsyncpa [#allocation14], 0 }
  0x1e   :  { %31 = vsyncpa [#allocation14 + $0x1], 0  ;;  %s1393_s0 = smov 0   ;;  %s1395_s1 = smov 0  }
  0x1f   :  { %s1397_s12 = smov 0   ;;  %s1399_s13 = smov 0  }
  0x20   :  { %s1401_s14 = smov 0   ;;  %s1403_s15 = smov 0  }
  0x21   :  { %s1405_s16 = smov 0   ;;  %s1407_s17 = smov 0  }
  0x22   :  { %s1409_s18 = smov 0   ;;  %s1411_s19 = smov 0  }
  0x23   :  { %s1413_s20 = smov 0   ;;  %s1415_s21 = smov 0  }
  0x24 LB: > { %1945 = sst [smem:[#allocation25_spill]] %s1305_s15  ;;  %s1452_s22 = sadd.s32 4294967295, %s1329_s21   ;;  %s1329_s21 = sphi %s1415_s21, %s37_s21   ;;  %s1325_s20 = sphi %s1413_s20, %s2001_s20   ;;  %s1321_s19 = sphi %s1411_s19, %s2000_s19   ;;  %s1317_s18 = sphi %s1409_s18, %s1991_s18   ;;  %s1313_s17 = sphi %s1407_s17, %s1999_s17   ;;  %s1309_s16 = sphi %s1405_s16, %s1998_s16   ;;  %s1305_s15 = sphi %s1403_s15, %s1989_s15   ;;  %s1301_s14 = sphi %s1401_s14, %s1997_s14   ;;  %s1297_s13 = sphi %s1399_s13, %s1996_s13   ;;  %s1293_s12 = sphi %s1397_s12, %s1995_s12   ;;  %s1289_s1 = sphi %s1395_s1, %s1994_s1   ;;  %s1285_s0 = sphi %s1393_s0, %s1993_s0  }
  0x25   : > { %1946 = sst [smem:[#allocation26_spill]] %s1317_s18  ;;  %s49_s23 = sadd.s32 1, %s1325_s20 }
  0x26   : > { %1947 = sst [smem:[#allocation27_spill]] %s1321_s19  ;;  %p51_p8 = scmp.ge.s32.totalorder %s49_s23, 2 }
  0x27   : > { %p1928_p9 = scmp.eq.s32.totalorder %s1329_s21, 0  ;;  %p1927_p10 = scmp.eq.s32.totalorder %s1452_s22, 0 }
  0x28   : > { %s86_s24 = sld [smem:[#allocation4 + %s1325_s20]]  ;;  %s2003_s23 = smov (%p51_p8, %s49_s23), 0 }
  0x29   : > { %1948 = sst [smem:[#allocation28_spill]] %s2003_s23  ;;  %s92_s25 = sadd.s32 1, %s1305_s15 }
  0x2a   : > { %p99_p11 = scmp.ne.s32.totalorder %s1305_s15, %s1301_s14  ;;  %s88_s26 = sld [smem:[#allocation4 + %s2003_s23]] }
  0x2b   : > { %p105_p12 = scmp.ne.s32.totalorder %s1301_s14, %s1297_s13  ;;  %p1926_p2 = scmp.lt.s32.totalorder %s1329_s21, 2 }
  0x2c   : > { %p1467_p13 = por %p99_p11, %p1928_p9  ;;  %s231_s29 = sand.u32 1, %s1329_s21  }
  0x2d   : > { %p1474_p1 = por %p105_p12, %p1927_p10  ;;  %s233_s30 = sand.u32 1, %s1305_s15  }
  0x2e   : > { %s763_s7 = sshll.u32 %s233_s30, 7  ;;  %p1499_p4 = pnand %p1926_p2, %p1467_p13 }
  0x2f   : > { %s1950_s28 = scalar_select %p1474_p1, 1, 0 }
  0x30   : > { %s89_s8 = ssub.s32 %s86_s24, %s88_s26  ;;  %s235_s9 = scalar_lea.vmem [#allocation9], %s763_s7 }
  0x31   : > { %p90_p3 = scmp.eq.s32.totalorder %s89_s8, 0  ;;  %s244_s10 = sshll.u32 %s235_s9, 4  ;;  %s1493_s10 = int_to_ptr.vmem [resolvable:$true] %s244_s10 }
  0x32   : > { %s908_s11 = scalar_select %p1467_p13, [#allocation4], [#allocation16] }
  0x33   : > { %s1484_s13 = scalar_select %p90_p3, %s1305_s15, %s92_s25  }
  0x34   : > { %s909_s6 = scalar_select %p1467_p13, %s1325_s20, 0 }
  0x35   : > { %1951 = sst [smem:[#allocation29_spill]] %s1484_s13  ;;  %s2005_s11 = smov (!%p1926_p2, %s908_s11), [#allocation18] }
  0x36   : > { %s2007_s6 = smov (!%p1926_p2, %s909_s6), 0  ;;  %p769_p5 = scmp.ge.s32.totalorder %s1329_s21, 1 }
  0x37   : > { %s237_s26 = sld [smem:[%s2005_s11 + %s2007_s6]]  ;;  %p273_p6 = scmp.lt.s32.totalorder %s1329_s21, 3 }
  0x38   : > { %s1954_s3 = sld [smem:[#allocation31_spill]]  ;;  %s1517_s13 = scalar_lea.sflag [#allocation10], %s231_s29 }
  0x39   : > { %p1505_p7 = pnand %p769_p5, %p273_p6  ;;  %s1515_s27 = sld [smem:[#allocation4 + %s1325_s20]] }
  0x3a   : > { %p1069_p11 = pneg %p1499_p4 }
  0x3b   : > { %s1953_s25 = scalar_select %p1505_p7, 1, 0 }
  0x3d   : > { %s785_s30 = sshll.u32 %s237_s26, 11 }
  0x3e   : > { %s1512_s9 = scalar_lea.hbm %s1954_s3, %s785_s30  ;;  %s1072_s30 = scalar_lea.hbm %s1954_s3, 2048 }
  0x3f   : > { %s1067_s6 = scalar_lea.hbm %s1512_s9, 2048  ;;  %p1073_p3 = scmp.lt.u32.totalorder %s1512_s9, %s1954_s3 }
  0x40   : > { %p1068_p8 = scmp.ne.s32.totalorder %s1512_s9, %s1067_s6  ;;  %p1074_p5 = scmp.lt.u32.totalorder %s1072_s30, %s1067_s6 }
  0x41   : > { %p1076_p0 = scmp.lt.u32.totalorder %s1067_s6, %s1512_s9 }
  0x42   : > { %p1070_p12 = pnand %p1069_p11, %p1068_p8  ;;  %p1075_p6 = por %p1074_p5, %p1073_p3 }
  0x44   : > { %p1071_p13 = pneg %p1070_p12  ;;  %p1077_p2 = por %p1076_p0, %p1075_p6 }
  0x46   : > { %p1078_p10 = pnand %p1077_p2, %p1071_p13 }
  0x48   : > { %1081 = shalt.err (!%p1078_p10)
}
  0x49   : > { %s1082_s29 = scalar_lea.vmem %s1493_s10, 2048  ;;  %s1333_s11 = smov [#allocation9]  }
  0x4a   : > { %p1083_p8 = scmp.ne.s32.totalorder %s1493_s10, %s1082_s29  ;;  %s1087_s26 = sshll.u32 %s1333_s11, 4  ;;  %s1088_s26 = int_to_ptr.vmem [resolvable:$false] %s1087_s26 }
  0x4b   : > { %s1089_s7 = scalar_lea.vmem %s1088_s26, 4096  ;;  %p1090_p1 = scmp.lt.s32.totalorder %s1493_s10, %s1088_s26 }
  0x4c   : > { %p1085_p12 = pnand %p1083_p8, %p1069_p11  ;;  %p1091_p3 = scmp.lt.s32.totalorder %s1089_s7, %s1082_s29 }
  0x4e   : > { %p1086_p9 = pneg %p1085_p12  ;;  %p1092_p5 = por %p1091_p3, %p1090_p1 }
  0x50   : > { %p1093_p0 = pnand %p1092_p5, %p1086_p9 }
  0x52   : > { %1096 = shalt.err (!%p1093_p0)
}
  0x53   : > { %s1930_s6 = smov 128   ;;  %s1932_s30 = smov 8  }
  0x54   : > { %929 = dma.hbm_to_vmem [thread:$0]  (!%p1499_p4), %s1512_s9, 2048, %s1493_s10, %s1517_s13, %s1930_s6, %s1930_s6, %s1932_s30  }
  0x55   : > { %s56_s8 = sld [smem:[#allocation4 + %s2003_s23]]  ;;  %s57_s29 = ssub.s32 %s1325_s20, %s2003_s23 }
  0x56   : > { %s62_s11 = sadd.s32 1, %s1317_s18  ;;  %p69_p9 = scmp.ne.s32.totalorder %s1317_s18, %s1313_s17 }
  0x57   : > { %p75_p10 = scmp.ne.s32.totalorder %s1313_s17, %s1309_s16  ;;  %p116_p1 = scmp.eq.s32.totalorder %s57_s29, 0 }
  0x58   : > { %p1955_p2 = scmp.eq.s32.totalorder %s1329_s21, 0  ;;  %s207_s10 = sand.u32 1, %s1317_s18  }
  0x59   : > { %p1957_p4 = scmp.eq.s32.totalorder %s1452_s22, 0  ;;  %s760_s16 = sshll.u32 %s207_s10, 6 }
  0x5a   : > { %p1558_p11 = por %p1955_p2, %p69_p9  ;;  %s761_s9 = sshll.u32 %s1325_s20, 3 }
  0x5b   : > { %p1565_p13 = por %p1957_p4, %p75_p10  ;;  %s58_s7 = ssub.s32 %s1515_s27, %s56_s8 }
  0x5c   : > { %s59_s6 = sor.u32 %s58_s7, %s57_s29  ;;  %s211_s30 = scalar_lea.vmem [#allocation6], %s760_s16 }
  0x5d   : > { %s1958_s24 = scalar_select %p1565_p13, 1, 0 }
  0x5e   : > { %s221_s3 = sshll.u32 %s211_s30, 4  ;;  %p60_p6 = scmp.eq.s32.totalorder %s59_s6, 0  ;;  %s1571_s3 = int_to_ptr.vmem [resolvable:$true] %s221_s3 }
  0x5f   : > { %s905_s23 = scalar_select %p1558_p11, [#allocation4], [#allocation15] }
  0x60   : > { %s1576_s15 = scalar_select %p60_p6, %s1317_s18, %s62_s11  }
  0x61   : > { %s906_s5 = scalar_select %p1558_p11, %s1325_s20, 0 }
  0x62   : > { %1959 = sst [smem:[#allocation30_spill]] %s1576_s15  ;;  %p1960_p8 = scmp.lt.s32.totalorder %s1329_s21, 2 }
  0x63   : > { %s757_s30 = sadd.s32 4294967294, %s1329_s21   ;;  %s118_s8 = sadd.s32 1, %s1293_s12 }
  0x64   : > { %s2009_s23 = smov (!%p1960_p8, %s905_s23), [#allocation17]  ;;  %p1961_p12 = pmov %p1960_p8 }
  0x65   : > { %p1962_p3 = pmov %p1960_p8  ;;  %p1939_p0 = scmp.ne.s32.totalorder %s1293_s12, %s1289_s1 }
  0x66   : > { %s2011_s5 = smov (!%p1961_p12, %s906_s5), 0  ;;  %p1964_p9 = pmov %p1955_p2 }
  0x67   : > { %p1589_p5 = pnand %p1962_p3, %p1558_p11  ;;  %s213_s6 = sld [smem:[%s2009_s23 + %s2011_s5]] }
  0x68   : > { %s1599_s11 = scalar_select %p116_p1, %s1293_s12, %s118_s8  }
  0x69   : > { %p1606_p10 = por %p1939_p0, %p1964_p9  ;;  %s1618_s5 = scalar_lea.sflag [#allocation7], %s207_s10 }
  0x6a   : > { %p1099_p4 = pneg %p1589_p5  ;;  %s1102_s15 = scalar_lea.hbm %s1919_s2, 2048 }
  0x6d   : > { %s218_s16 = sadd.s32 %s761_s9, %s213_s6 }
  0x6e   : > { %s762_s26 = sshll.u32 %s218_s16, 7 }
  0x6f   : > { %s1615_s19 = scalar_lea.hbm %s1919_s2, %s762_s26 }
  0x70   : > { %s1097_s23 = scalar_lea.hbm %s1615_s19, 1024  ;;  %p1103_p12 = scmp.lt.u32.totalorder %s1615_s19, %s1919_s2 }
  0x71   : > { %p1098_p11 = scmp.ne.s32.totalorder %s1615_s19, %s1097_s23  ;;  %p1104_p3 = scmp.lt.u32.totalorder %s1102_s15, %s1097_s23 }
  0x72   : > { %p1106_p1 = scmp.lt.u32.totalorder %s1097_s23, %s1615_s19 }
  0x73   : > { %p1100_p6 = pnand %p1099_p4, %p1098_p11  ;;  %p1105_p9 = por %p1104_p3, %p1103_p12 }
  0x75   : > { %p1101_p8 = pneg %p1100_p6  ;;  %p1107_p0 = por %p1106_p1, %p1105_p9 }
  0x77   : > { %p1108_p2 = pnand %p1107_p0, %p1101_p8 }
  0x79   : > { %1111 = shalt.err (!%p1108_p2)
}
  0x7a   : > { %s1112_s10 = scalar_lea.vmem %s1571_s3, 1024  ;;  %s1336_s8 = smov [#allocation6]  }
  0x7b   : > { %p1113_p11 = scmp.ne.s32.totalorder %s1571_s3, %s1112_s10  ;;  %s1117_s16 = sshll.u32 %s1336_s8, 4  ;;  %s1118_s16 = int_to_ptr.vmem [resolvable:$false] %s1117_s16 }
  0x7c   : > { %s1119_s26 = scalar_lea.vmem %s1118_s16, 2048  ;;  %p1120_p7 = scmp.lt.s32.totalorder %s1571_s3, %s1118_s16 }
  0x7d   : > { %p1115_p6 = pnand %p1113_p11, %p1099_p4  ;;  %p1121_p12 = scmp.lt.s32.totalorder %s1119_s26, %s1112_s10 }
  0x7f   : > { %p1116_p13 = pneg %p1115_p6  ;;  %p1122_p3 = por %p1121_p12, %p1120_p7 }
  0x81   : > { %p1123_p1 = pnand %p1122_p3, %p1116_p13 }
  0x83   : > { %1126 = shalt.err (!%p1123_p1)
}
  0x84   : > { %s1966_s23 = smov 8   ;;  %s1967_s29 = smov 128  }
  0x85   : > { %924 = dma.hbm_to_vmem [thread:$0]  (!%p1589_p5), %s1615_s19, 1024, %s1571_s3, %s1618_s5, %s1967_s29, %s1967_s29, %s1966_s23  }
  0x86   : > { %p1968_p7 = scmp.eq.s32.totalorder %s1452_s22, 0  ;;  %p1969_p13 = scmp.ne.s32.totalorder %s1289_s1, %s1285_s0 }
  0x87   : > { %p1971_p2 = scmp.ne.s32.totalorder %s1293_s12, %s1289_s1  ;;  %p1972_p4 = scmp.eq.s32.totalorder %s1452_s22, 1 }
  0x88   : > { %p1654_p0 = por %p1969_p13, %p1968_p7  ;;  %p161_p9 = scmp.eq.s32.totalorder %s757_s30, 1 }
  0x89   : > { %p1663_p8 = por %p1972_p4, %p1971_p2  ;;  %s256_s15 = sand.u32 1, %s1293_s12  }
  0x8a   : > { %s766_s18 = sshll.u32 %s256_s15, 6  ;;  %s786_s6 = sshll.u32 %s1325_s20, 10 }
  0x8b   : > { %s1973_s9 = scalar_select %p1663_p8, 1, 0 }
  0x8c   : > { %p1974_p11 = pmov %p1969_p13  ;;  %s1681_s10 = scalar_lea.hbm %s1921_s4, %s786_s6 }
  0x8d   : > { %s258_s8 = scalar_lea.vmem [#allocation11], %s766_s18  ;;  %p1976_p5 = scmp.lt.s32.totalorder %s1329_s21, 2 }
  0x8e   : > { %p1674_p6 = por %p161_p9, %p1974_p11  ;;  %s265_s16 = sshll.u32 %s258_s8, 4  ;;  %s1683_s16 = int_to_ptr.vmem [resolvable:$true] %s265_s16 }
  0x8f   : > { %p1689_p12 = pnand %p1976_p5, %p1606_p10  ;;  %s1127_s26 = scalar_lea.hbm %s1681_s10, 1024 }
  0x90   : > { %s1975_s3 = scalar_select %p1674_p6, 1, 0 }
  0x91   : > { %p1128_p3 = scmp.ne.s32.totalorder %s1681_s10, %s1127_s26  ;;  %p1129_p1 = pneg %p1689_p12 }
  0x92   : > { %s1132_s6 = scalar_lea.hbm %s1921_s4, 2048  ;;  %p1133_p10 = scmp.lt.u32.totalorder %s1681_s10, %s1921_s4 }
  0x93   : > { %p1130_p7 = pnand %p1129_p1, %p1128_p3  ;;  %p1134_p2 = scmp.lt.u32.totalorder %s1132_s6, %s1127_s26 }
  0x94   : > { %p1136_p9 = scmp.lt.u32.totalorder %s1127_s26, %s1681_s10 }
  0x95   : > { %p1131_p13 = pneg %p1130_p7  ;;  %p1135_p4 = por %p1134_p2, %p1133_p10 }
  0x97   : > { %p1137_p11 = por %p1136_p9, %p1135_p4 }
  0x99   : > { %p1138_p5 = pnand %p1137_p11, %p1131_p13 }
  0x9b   : > { %1141 = shalt.err (!%p1138_p5)
}
  0x9c   : > { %s1142_s5 = scalar_lea.vmem %s1683_s16, 1024  ;;  %s1337_s8 = smov [#allocation11]  }
  0x9d   : > { %p1143_p3 = scmp.ne.s32.totalorder %s1683_s16, %s1142_s5  ;;  %s1147_s15 = sshll.u32 %s1337_s8, 4  ;;  %s1148_s15 = int_to_ptr.vmem [resolvable:$false] %s1147_s15 }
  0x9e   : > { %s1149_s18 = scalar_lea.vmem %s1148_s15, 2048  ;;  %p1150_p8 = scmp.lt.s32.totalorder %s1683_s16, %s1148_s15 }
  0x9f   : > { %p1145_p7 = pnand %p1143_p3, %p1129_p1  ;;  %p1151_p10 = scmp.lt.s32.totalorder %s1149_s18, %s1142_s5 }
  0xa1   : > { %p1146_p6 = pneg %p1145_p7  ;;  %p1152_p2 = por %p1151_p10, %p1150_p8 }
  0xa3   : > { %p1153_p4 = pnand %p1152_p2, %p1146_p6 }
  0xa5   : > { %1156 = shalt.err (!%p1153_p4)
}
  0xa6   : > { %932 = dma.hbm_to_vmem [thread:$0]  (!%p1689_p12), %s1681_s10, 1024, %s1683_s16, %s1517_s13, %s1967_s29, %s1967_s29, %s1966_s23  }
  0xa7   : > { %p1978_p1 = scmp.ne.s32.totalorder %s1953_s25, 0 }
  0xa8   : > { %s279_s26 = sand.u32 (!%p1978_p1), 1, %s1313_s17   ;;  %p1979_p8 = scmp.ne.s32.totalorder (!%p1978_p1), %s1958_s24, 0 }
  0xa9   : > { %277 = sbr.rel (%p1978_p1) target bundleno = 507 (0x1fb), region = 32  ;;  %s770_s6 = sshll.u32 (!%p1978_p1), %s279_s26, 6 }
  0xaa   : > { %s280_s7 = scalar_lea.sflag (!%p1978_p1), [#allocation7], %s279_s26  ;;  %s1725_s19 = scalar_lea.vmem (!%p1978_p1), [#allocation6], %s770_s6 }
  0xb0   : > { %1264 = dma.done.wait (%p1979_p8), %s280_s7, 1024  }
  0xb1   : > { %1266 = vsyncadd (%p1979_p8), %s280_s7, 4294966272  ;;  %s288_s30 = sand.u32 1, %s1452_s22   ;;  %s290_s13 = sand.u32 1, %s1301_s14  }
  0xb2   : > { %s771_s23 = sshll.u32 %s290_s13, 7  ;;  %s289_s25 = scalar_lea.sflag [#allocation10], %s288_s30 }
  0xb3   : > { %s1733_s29 = scalar_lea.vmem [#allocation9], %s771_s23  ;;  %p1980_p6 = scmp.ne.s32.totalorder %s1950_s28, 0 }
  0xb5   : > { %1268 = dma.done.wait (%p1980_p6), %s289_s25, 2048  }
  0xb6   : > { %1270 = vsyncadd (%p1980_p6), %s289_s25, 4294965248  ;;  %s1740_s10 = sand.u32 1, %s1289_s1  }
  0xb7   : > { %s772_s24 = sshll.u32 %s1740_s10, 6 }
  0xb8   : > { %s1743_s16 = scalar_lea.vmem [#allocation11], %s772_s24 }
  0xb9   : > { %1272 = dma.done.wait (%p1654_p0), %s289_s25, 1024  }
  0xba   : > { %1274 = vsyncadd (%p1654_p0), %s289_s25, 4294966272  ;;  %s1981_s22 = sld [smem:[#allocation27_spill]]  ;;  %v1338_v0 = vmov 0.0   ;;  %s1750_s28 = scalar_lea.vmem [#allocation12], %s772_s24 }
  0xbb   : > { %354 = vst [vmem:[#allocation2] sm:$0xff] %v1338_v0  ;;  %355 = vst [vmem:[#allocation2 + $0x8] sm:$0xff] %v1338_v0  ;;  %s1752_s8 = scalar_lea.vmem [#allocation13], %s772_s24 }
  0xbc   : > { %356 = vst [vmem:[#allocation2 + $0x10] sm:$0xff] %v1338_v0  ;;  %357 = vst [vmem:[#allocation2 + $0x18] sm:$0xff] %v1338_v0 }
  0xbd   : > { %358 = vst [vmem:[#allocation2 + $0x20] sm:$0xff] %v1338_v0  ;;  %359 = vst [vmem:[#allocation2 + $0x28] sm:$0xff] %v1338_v0 }
  0xbe   : > { %360 = vst [vmem:[#allocation2 + $0x30] sm:$0xff] %v1338_v0  ;;  %361 = vst [vmem:[#allocation2 + $0x38] sm:$0xff] %v1338_v0 }
  0xc0   : > { %s362_s5 = sld [smem:[#allocation5 + %s1981_s22]] }
  0xc6   : > { %p776_p12 = scmp.le.s32.totalorder %s362_s5, 0 }
  0xc7   : > { %v383_v1 = vld [vmem:[%s1733_s29] sm:$0xff] (!%p776_p12)  ;;  %v384_v2 = vld [vmem:[%s1733_s29 + $0x8] sm:$0xff] (!%p776_p12)  ;;  %v385_v3 = vld [vmem:[%s1733_s29 + $0x10] sm:$0xff] (!%p776_p12) }
  0xc8   : > { %366 = sbr.rel (%p776_p12) target bundleno = 454 (0x1c6), region = 52  ;;  %v857_v4 = vpack.c.bf16 (!%p776_p12), %v384_v2, %v383_v1  ;;  %v386_v5 = vld [vmem:[%s1733_s29 + $0x18] sm:$0xff] (!%p776_p12)  ;;  %v387_v7 = vld [vmem:[%s1733_s29 + $0x20] sm:$0xff] (!%p776_p12)  ;;  %v388_v8 = vld [vmem:[%s1733_s29 + $0x28] sm:$0xff] (!%p776_p12) }
  0xc9   : > { %v861_v6 = vpack.c.bf16 (!%p776_p12), %v386_v5, %v385_v3  ;;  %v865_v9 = vpack.c.bf16 (!%p776_p12), %v388_v8, %v387_v7  ;;  %v375_v10 = vld [vmem:[%s1725_s19] sm:$0xff] (!%p776_p12)  ;;  %v389_v12 = vld [vmem:[%s1733_s29 + $0x30] sm:$0xff] (!%p776_p12)  ;;  %v390_v13 = vld [vmem:[%s1733_s29 + $0x38] sm:$0xff] (!%p776_p12) }
  0xca   : > { %858 = vmatprep.subr.bf16.mxu0 (!%p776_p12), %v857_v4  ;;  %889 = vmatprep.subr.bf16.mxu1 (!%p776_p12), %v857_v4  ;;  %v379_v11 = vld [vmem:[%s1725_s19 + $0x20] sm:$0xff] (!%p776_p12)  ;;  %v869_v14 = vpack.c.bf16 (!%p776_p12), %v390_v13, %v389_v12  ;;  %v392_v16 = vld [vmem:[%s1733_s29 + $0x48] sm:$0xff] (!%p776_p12)  ;;  %v393_v18 = vld [vmem:[%s1733_s29 + $0x50] sm:$0xff] (!%p776_p12) }
  0xcb   : > { %860 = vmatpush3.bf16.msra.mxu0 (!%p776_p12), %v857_v4  ;;  %897 = vmatpush3.bf16.msra.mxu1 (!%p776_p12), %v857_v4  ;;  %v391_v15 = vld [vmem:[%s1733_s29 + $0x40] sm:$0xff] (!%p776_p12)  ;;  %v394_v19 = vld [vmem:[%s1733_s29 + $0x58] sm:$0xff] (!%p776_p12)  ;;  %v396_v22 = vld [vmem:[%s1733_s29 + $0x68] sm:$0xff] (!%p776_p12) }
  0xcc   : > { %862 = vmatprep.subr.bf16.mxu0 (!%p776_p12), %v861_v6  ;;  %890 = vmatprep.subr.bf16.mxu1 (!%p776_p12), %v861_v6  ;;  %v873_v17 = vpack.c.bf16 (!%p776_p12), %v392_v16, %v391_v15  ;;  %v877_v20 = vpack.c.bf16 (!%p776_p12), %v394_v19, %v393_v18  ;;  %v395_v21 = vld [vmem:[%s1733_s29 + $0x60] sm:$0xff] (!%p776_p12)  ;;  %v397_v24 = vld [vmem:[%s1733_s29 + $0x70] sm:$0xff] (!%p776_p12)  ;;  %v398_v25 = vld [vmem:[%s1733_s29 + $0x78] sm:$0xff] (!%p776_p12) }
  0xcd   : > { %845 = vmatprep.mubr.f32.mxu0 (!%p776_p12), %v375_v10  ;;  %851 = vmatprep.mubr.f32.mxu1 (!%p776_p12), %v379_v11  ;;  %v881_v23 = vpack.c.bf16 (!%p776_p12), %v396_v22, %v395_v21  ;;  %v885_v26 = vpack.c.bf16 (!%p776_p12), %v398_v25, %v397_v24  ;;  %v376_v27 = vld [vmem:[%s1725_s19 + $0x8] sm:$0xff] (!%p776_p12)  ;;  %v377_v29 = vld [vmem:[%s1725_s19 + $0x10] sm:$0xff] (!%p776_p12)  ;;  %v378_v31 = vld [vmem:[%s1725_s19 + $0x18] sm:$0xff] (!%p776_p12) }
  0xce   : > { %v380_v28 = vld [vmem:[%s1725_s19 + $0x28] sm:$0xff] (!%p776_p12)  ;;  %v381_v30 = vld [vmem:[%s1725_s19 + $0x30] sm:$0xff] (!%p776_p12)  ;;  %v382_v32 = vld [vmem:[%s1725_s19 + $0x38] sm:$0xff] (!%p776_p12) }
  0xcf   : > { %864 = vmatpush3.bf16.msra.mxu0 %v861_v6  ;;  %898 = vmatpush3.bf16.msra.mxu1 %v861_v6  ;;  %v368_v33 = vld [vmem:[#allocation2 + $0x8] sm:$0xff]  ;;  %v367_v35 = vld [vmem:[#allocation2] sm:$0xff]  ;;  %v370_v45 = vld [vmem:[#allocation2 + $0x18] sm:$0xff] }
  0xd0   : > { %866 = vmatprep.subr.bf16.mxu0 %v865_v9  ;;  %891 = vmatprep.subr.bf16.mxu1 %v865_v9  ;;  %v372_v34 = vld [vmem:[#allocation2 + $0x28] sm:$0xff]  ;;  %v371_v36 = vld [vmem:[#allocation2 + $0x20] sm:$0xff]  ;;  %v374_v46 = vld [vmem:[#allocation2 + $0x38] sm:$0xff] }
  0xd1   : > { %v369_v47 = vld [vmem:[#allocation2 + $0x10] sm:$0xff] }
  0xd2   : > { %v373_v48 = vld [vmem:[#allocation2 + $0x30] sm:$0xff] }
  0xd3   : > { %868 = vmatpush3.bf16.msra.mxu0 %v865_v9  ;;  %899 = vmatpush3.bf16.msra.mxu1 %v865_v9 }
  0xd4   : > { %870 = vmatprep.subr.bf16.mxu0 %v869_v14  ;;  %892 = vmatprep.subr.bf16.mxu1 %v869_v14 }
  0xd7   : > { %872 = vmatpush3.bf16.msra.mxu0 %v869_v14  ;;  %900 = vmatpush3.bf16.msra.mxu1 %v869_v14 }
  0xd8   : > { %874 = vmatprep.subr.bf16.mxu0 %v873_v17  ;;  %893 = vmatprep.subr.bf16.mxu1 %v873_v17 }
  0xdb   : > { %876 = vmatpush3.bf16.msra.mxu0 %v873_v17  ;;  %901 = vmatpush3.bf16.msra.mxu1 %v873_v17 }
  0xdc   : > { %878 = vmatprep.subr.bf16.mxu0 %v877_v20  ;;  %894 = vmatprep.subr.bf16.mxu1 %v877_v20 }
  0xdf   : > { %880 = vmatpush3.bf16.msra.mxu0 %v877_v20  ;;  %902 = vmatpush3.bf16.msra.mxu1 %v877_v20 }
  0xe0   : > { %882 = vmatprep.subr.bf16.mxu0 %v881_v23  ;;  %895 = vmatprep.subr.bf16.mxu1 %v881_v23 }
  0xe3   : > { %884 = vmatpush3.bf16.msra.mxu0 %v881_v23  ;;  %903 = vmatpush3.bf16.msra.mxu1 %v881_v23 }
  0xe4   : > { %886 = vmatprep.subr.bf16.mxu0 %v885_v26  ;;  %896 = vmatprep.subr.bf16.mxu1 %v885_v26 }
  0xe7   : > { %888 = vmatpush3.bf16.msra.mxu0 %v885_v26  ;;  %904 = vmatpush3.bf16.msra.mxu1 %v885_v26 }
  0xea   : > { %846 = vmatmul.mubr.f32.vlgmr.msra.gmra.mrb[0].mxu0 %v376_v27  ;;  %852 = vmatmul.mubr.f32.vlgmr.msra.gmra.mrb[0].mxu1 %v380_v28 }
  0xeb   : > { %848 = vmatprep.mubr.f32.mxu0 %v377_v29  ;;  %854 = vmatprep.mubr.f32.mxu1 %v381_v30 }
  0xee   : > { %849 = vmatmul.mubr.f32.gmra.mrb[2].mxu0 %v378_v31  ;;  %855 = vmatmul.mubr.f32.gmra.mrb[2].mxu1 %v382_v32 }
 0x1bd   : > { %v847_v37 = vpop.f32.mrb[0].mxu0  ;;  %v853_v38 = vpop.f32.mrb[0].mxu1 }
 0x1be   : > { %v505_v39 = vadd.f32 %v847_v37, %v368_v33  ;;  %v509_v40 = vadd.f32 %v853_v38, %v372_v34  ;;  %v465_v41 = vpop.f32.mrb[1].mxu0  ;;  %v485_v42 = vpop.f32.mrb[1].mxu1 }
 0x1bf   : > { %v504_v43 = vadd.f32 %v465_v41, %v367_v35  ;;  %v508_v44 = vadd.f32 %v485_v42, %v371_v36 }
 0x1c0   : > { %513 = vst [vmem:[#allocation2 + $0x8] sm:$0xff] %v505_v39  ;;  %517 = vst [vmem:[#allocation2 + $0x28] sm:$0xff] %v509_v40 }
 0x1c1   : > { %512 = vst [vmem:[#allocation2] sm:$0xff] %v504_v43  ;;  %516 = vst [vmem:[#allocation2 + $0x20] sm:$0xff] %v508_v44  ;;  %v850_v49 = vpop.f32.mrb[2].mxu0  ;;  %v856_v50 = vpop.f32.mrb[2].mxu1 }
 0x1c2   : > { %v507_v51 = vadd.f32 %v850_v49, %v370_v45  ;;  %v511_v52 = vadd.f32 %v856_v50, %v374_v46  ;;  %v475_v53 = vpop.f32.mrb[3].mxu0  ;;  %v495_v54 = vpop.f32.mrb[3].mxu1 }
 0x1c3   : > { %v506_v55 = vadd.f32 %v475_v53, %v369_v47  ;;  %v510_v56 = vadd.f32 %v495_v54, %v373_v48 }
 0x1c4   : > { %515 = vst [vmem:[#allocation2 + $0x18] sm:$0xff] %v507_v51  ;;  %519 = vst [vmem:[#allocation2 + $0x38] sm:$0xff] %v511_v52 }
 0x1c5   : > { %514 = vst [vmem:[#allocation2 + $0x10] sm:$0xff] %v506_v55  ;;  %518 = vst [vmem:[#allocation2 + $0x30] sm:$0xff] %v510_v56 }
 0x1c6 PF: > { %s1982_s27 = sld [smem:[#allocation27_spill]]  ;;  %s582_s18 = sshll.u32 %s1750_s28, 4  ;;  %v531_v1 = vld [vmem:[%s1743_s16] sm:$0xff]  ;;  %v532_v3 = vld [vmem:[%s1743_s16 + $0x8] sm:$0xff]  ;;  %v533_v4 = vld [vmem:[%s1743_s16 + $0x10] sm:$0xff]  ;;  %s1794_s18 = int_to_ptr.vmem [resolvable:$true] %s582_s18 }
 0x1c7   : > { %v524_v58 = vld [vmem:[#allocation2 + $0x8] sm:$0xff]  ;;  %s1983_s7 = sld [smem:[#allocation32_spill]]  ;;  %v534_v5 = vld [vmem:[%s1743_s16 + $0x18] sm:$0xff]  ;;  %v535_v9 = vld [vmem:[%s1743_s16 + $0x20] sm:$0xff]  ;;  %s598_s30 = sshll.u32 %s1752_s8, 4  ;;  %s1814_s30 = int_to_ptr.vmem [resolvable:$true] %s598_s30 }
 0x1c8   : > { %v523_v57 = vld [vmem:[#allocation2] sm:$0xff]  ;;  %548 = vst [vmem:[%s1750_s28 + $0x8] sm:$0xff] %v524_v58  ;;  %v528_v62 = vld [vmem:[#allocation2 + $0x28] sm:$0xff]  ;;  %v540_v6 = vadd.f32 %v532_v3, %v524_v58  ;;  %v537_v11 = vld [vmem:[%s1743_s16 + $0x30] sm:$0xff]  ;;  %s1984_s25 = sld [smem:[#allocation33_spill]]  ;;  %s564_s24 = scalar_lea.sflag [#allocation8], %s1740_s10 }
 0x1c9   : > { %547 = vst [vmem:[%s1750_s28] sm:$0xff] %v523_v57  ;;  %v527_v61 = vld [vmem:[#allocation2 + $0x20] sm:$0xff]  ;;  %552 = vst [vmem:[%s1750_s28 + $0x28] sm:$0xff] %v528_v62  ;;  %v539_v2 = vadd.f32 %v531_v1, %v523_v57  ;;  %v536_v10 = vld [vmem:[%s1743_s16 + $0x28] sm:$0xff]  ;;  %s1157_s22 = scalar_lea.vmem %s1794_s18, 1024  ;;  %p1985_p13 = scmp.ne.s32.totalorder %s1973_s9, 0 }
 0x1ca   : > { %551 = vst [vmem:[%s1750_s28 + $0x20] sm:$0xff] %v527_v61  ;;  %v543_v12 = vadd.f32 %v535_v9, %v527_v61  ;;  %v544_v13 = vadd.f32 %v536_v10, %v528_v62  ;;  %v538_v15 = vld [vmem:[%s1743_s16 + $0x38] sm:$0xff]  ;;  %556 = vst [vmem:[%s1752_s8 + $0x8] sm:$0xff] %v540_v6  ;;  %p1158_p0 = scmp.ne.s32.totalorder %s1794_s18, %s1157_s22  ;;  %s1339_s16 = smov [#allocation12]  }
 0x1cb   : > { %v526_v60 = vld [vmem:[#allocation2 + $0x18] sm:$0xff]  ;;  %555 = vst [vmem:[%s1752_s8] sm:$0xff] %v539_v2  ;;  %s1161_s5 = sshll.u32 %s1339_s16, 4  ;;  %s1162_s5 = int_to_ptr.vmem [resolvable:$false] %s1161_s5 }
 0x1cc   : > { %v525_v59 = vld [vmem:[#allocation2 + $0x10] sm:$0xff]  ;;  %s787_s15 = sshll.u32 %s1982_s27, 10  ;;  %550 = vst [vmem:[%s1750_s28 + $0x18] sm:$0xff] %v526_v60  ;;  %v530_v0 = vld [vmem:[#allocation2 + $0x38] sm:$0xff]  ;;  %v542_v8 = vadd.f32 %v534_v5, %v526_v60  ;;  %p1159_p9 = pnand %p1158_p0, %p1985_p13 }
 0x1cd   : > { %549 = vst [vmem:[%s1750_s28 + $0x10] sm:$0xff] %v525_v59  ;;  %v529_v63 = vld [vmem:[#allocation2 + $0x30] sm:$0xff]  ;;  %s1792_s19 = scalar_lea.hbm %s1983_s7, %s787_s15  ;;  %554 = vst [vmem:[%s1750_s28 + $0x38] sm:$0xff] %v530_v0  ;;  %v541_v7 = vadd.f32 %v533_v4, %v525_v59  ;;  %v546_v16 = vadd.f32 %v538_v15, %v530_v0  ;;  %p1164_p5 = scmp.lt.s32.totalorder %s1794_s18, %s1162_s5 }
 0x1ce   : > { %553 = vst [vmem:[%s1750_s28 + $0x30] sm:$0xff] %v529_v63  ;;  %v545_v14 = vadd.f32 %v537_v11, %v529_v63  ;;  %s1812_s29 = scalar_lea.hbm %s1984_s25, %s787_s15  ;;  %558 = vst [vmem:[%s1752_s8 + $0x18] sm:$0xff] %v542_v8  ;;  %p1160_p11 = pneg %p1159_p9 }
 0x1cf   : > { %557 = vst [vmem:[%s1752_s8 + $0x10] sm:$0xff] %v541_v7  ;;  %s1163_s28 = scalar_lea.vmem %s1162_s5, 2048 }
 0x1d0   : > { %p1165_p3 = scmp.lt.s32.totalorder %s1163_s28, %s1157_s22 }
 0x1d2   : > { %p1166_p7 = por %p1165_p3, %p1164_p5 }
 0x1d4   : > { %p1167_p10 = pnand %p1166_p7, %p1160_p11 }
 0x1d6   : > { %1170 = shalt.err (!%p1167_p10)
}
 0x1d7   : > { %s1171_s27 = scalar_lea.hbm %s1792_s19, 1024  ;;  %s1175_s6 = scalar_lea.hbm %s1983_s7, 2048 }
 0x1d8   : > { %p1172_p2 = scmp.ne.s32.totalorder %s1792_s19, %s1171_s27  ;;  %p1176_p8 = scmp.lt.u32.totalorder %s1792_s19, %s1983_s7 }
 0x1d9   : > { %p1177_p6 = scmp.lt.u32.totalorder %s1175_s6, %s1171_s27  ;;  %p1179_p0 = scmp.lt.u32.totalorder %s1171_s27, %s1792_s19 }
 0x1da   : > { %p1173_p4 = pnand %p1172_p2, %p1985_p13 }
 0x1db   : > { %p1178_p12 = por %p1177_p6, %p1176_p8 }
 0x1dc   : > { %p1174_p1 = pneg %p1173_p4 }
 0x1dd   : > { %p1180_p9 = por %p1179_p0, %p1178_p12 }
 0x1df   : > { %p1181_p11 = pnand %p1180_p9, %p1174_p1 }
 0x1e1   : > { %1184 = shalt.err (!%p1181_p11)
}
 0x1e2   : > { %s1340_s22 = smov 128   ;;  %s1341_s16 = smov 8   ;;  %559 = vst [vmem:[%s1752_s8 + $0x20] sm:$0xff] %v543_v12  ;;  %560 = vst [vmem:[%s1752_s8 + $0x28] sm:$0xff] %v544_v13 }
 0x1e3   : > { %915 = dma.vmem_to_hbm [thread:$0]  (%p1985_p13), %s1794_s18, 1024, %s1792_s19, %s564_s24, %s1340_s22, %s1340_s22, %s1341_s16  }
 0x1e4   : > { %561 = vst [vmem:[%s1752_s8 + $0x30] sm:$0xff] %v545_v14  ;;  %562 = vst [vmem:[%s1752_s8 + $0x38] sm:$0xff] %v546_v16  ;;  %s569_s5 = scalar_lea.sflag [#allocation14], %s1740_s10  ;;  %s1185_s28 = scalar_lea.vmem %s1814_s30, 1024 }
 0x1e5   : > { %p1186_p5 = scmp.ne.s32.totalorder %s1814_s30, %s1185_s28  ;;  %s1342_s27 = smov [#allocation13]  }
 0x1e6   : > { %s1189_s15 = sshll.u32 %s1342_s27, 4  ;;  %s1190_s15 = int_to_ptr.vmem [resolvable:$false] %s1189_s15 }
 0x1e7   : > { %p1187_p3 = pnand %p1186_p5, %p1985_p13  ;;  %s1191_s26 = scalar_lea.vmem %s1190_s15, 2048 }
 0x1e8   : > { %p1192_p10 = scmp.lt.s32.totalorder %s1814_s30, %s1190_s15  ;;  %p1193_p2 = scmp.lt.s32.totalorder %s1191_s26, %s1185_s28 }
 0x1e9   : > { %p1188_p7 = pneg %p1187_p3 }
 0x1ea   : > { %p1194_p4 = por %p1193_p2, %p1192_p10 }
 0x1ec   : > { %p1195_p1 = pnand %p1194_p4, %p1188_p7 }
 0x1ee   : > { %1198 = shalt.err (!%p1195_p1)
}
 0x1ef   : > { %s1199_s8 = scalar_lea.hbm %s1812_s29, 1024  ;;  %s1203_s24 = scalar_lea.hbm %s1984_s25, 2048 }
 0x1f0   : > { %p1200_p8 = scmp.ne.s32.totalorder %s1812_s29, %s1199_s8  ;;  %p1204_p0 = scmp.lt.u32.totalorder %s1812_s29, %s1984_s25 }
 0x1f1   : > { %p1205_p9 = scmp.lt.u32.totalorder %s1203_s24, %s1199_s8  ;;  %p1207_p5 = scmp.lt.u32.totalorder %s1199_s8, %s1812_s29 }
 0x1f2   : > { %p1201_p6 = pnand %p1200_p8, %p1985_p13 }
 0x1f3   : > { %p1206_p11 = por %p1205_p9, %p1204_p0 }
 0x1f4   : > { %p1202_p12 = pneg %p1201_p6 }
 0x1f5   : > { %p1208_p3 = por %p1207_p5, %p1206_p11 }
 0x1f7   : > { %p1209_p7 = pnand %p1208_p3, %p1202_p12 }
 0x1f9   : > { %1212 = shalt.err (!%p1209_p7)
}
 0x1fa   : > { %916 = dma.vmem_to_hbm [thread:$0]  (%p1985_p13), %s1814_s30, 1024, %s1812_s29, %s569_s5, %s1340_s22, %s1340_s22, %s1341_s16  }
 0x1fb PF: > { %s613_s23 = sand.u32 1, %s1285_s0   ;;  %p1986_p10 = scmp.ne.s32.totalorder %s1975_s3, 0 }
 0x1fc   : > { %p1987_p2 = scmp.ge.s32.totalorder %s1329_s21, 2  ;;  %s614_s28 = scalar_lea.sflag [#allocation8], %s613_s23 }
 0x1fe   : > { %p934_p4 = pnand %p1987_p2, %p1986_p10 }
 0x200   : > { %1276 = dma.done.wait (!%p934_p4), %s614_s28, 1024  }
 0x201   : > { %1278 = vsyncadd (!%p934_p4), %s614_s28, 4294966272  ;;  %s623_s9 = scalar_lea.sflag [#allocation14], %s613_s23 }
 0x202   : > { %1280 = dma.done.wait (!%p934_p4), %s623_s9, 1024  }
 0x203   : > { %1282 = vsyncadd (!%p934_p4), %s623_s9, 4294966272  ;;  %s37_s21 = sadd.s32 1, %s1329_s21   ;;  %s1988_s10 = sld [smem:[#allocation25_spill]] }
 0x204   : > { %p34_p1 = scmp.ge.s32.totalorder %s37_s21, 4   ;;  %s1989_s15 = sld [smem:[#allocation29_spill]] }
 0x205   : > { %s1990_s30 = sld [smem:[#allocation26_spill]]  ;;  %s1991_s18 = sld [smem:[#allocation30_spill]] }
 0x206   : > { %s1992_s3 = sld [smem:[#allocation28_spill]]  ;;  %s1993_s0 = smov %s1289_s1 }
 0x207   : > { %s1994_s1 = smov %s1293_s12  ;;  %s1995_s12 = smov %s1599_s11 }
 0x208   : > { %s1996_s13 = smov %s1301_s14  ;;  %s1998_s16 = smov %s1313_s17 }
 0x209   : > { %s1997_s14 = smov %s1988_s10  ;;  %s2000_s19 = smov %s1325_s20 }
 0x20a   :  { %36 = sbr.rel (!%p34_p1) target bundleno = 36 (0x24), region = 130 }
 0x20b   : > { %s1999_s17 = smov %s1990_s30 }
 0x20c   : > { %s2001_s20 = smov %s1992_s3 }
 0x211   :  { %628 = vsyncpa [#allocation7], 1 }
 0x212   :  { %630 = vsyncpa [#allocation7 + $0x1], 1 }
 0x213   :  { %631 = vsyncpa [#allocation10], 1 }
 0x214   :  { %633 = vsyncpa [#allocation10 + $0x1], 1 }
 0x215   :  { %634 = vsyncpa [#allocation8], 1 }
 0x216   :  { %636 = vsyncpa [#allocation8 + $0x1], 1 }
 0x217   :  { %637 = vsyncpa [#allocation14], 1 }
 0x218   :  { %639 = vsyncpa [#allocation14 + $0x1], 1 }

</bundles_post_ra>
